<compile_context>
chip_gen: v7x
topology: tpu7x:2x2x1
jax: 0.10.0
libtpu: 0.0.40
codegen_flags: <defaults>
</compile_context>

<pallas_src>
import jax
import jax.numpy as jnp
from jax.experimental import pallas as pl
from jax.experimental.pallas import tpu as pltpu


def dssm_kernel(oh_ref, wf_ref, bc_ref, wl_ref, bl_ref, o_ref):
    # oh_ref: (1, 2*L*B, V) bf16  one-hot tokens, rows ordered (l, half, b)
    # wf_ref: (1, V, H)     bf16  fused  emb @ conv_weight.T  (gather + conv1d k=1)
    # bc_ref: (1, 1, H)     f32   conv bias
    # wl_ref: (1, H, D)     bf16  linear weight, pre-transposed
    # bl_ref: (1, 1, D)     f32   linear bias
    # o_ref:  (1, 2*B, D)   f32   encoder outputs (row = half*B + b)
    two_b = o_ref.shape[1]
    rows = oh_ref.shape[1]
    L = rows // two_b

    # Embedding lookup + Conv1d(kernel_size=1) fused into one MXU pass.
    h = jnp.dot(oh_ref[0], wf_ref[0],
                preferred_element_type=jnp.float32)           # (2*L*B, H) f32
    h = jnp.maximum(h + bc_ref[0], 0.0)                       # bias + ReLU in f32

    # Max-pool over the sequence: rows are l-major over (half, b), so pool over
    # L contiguous (2B, H) slabs with static, unrolled slices (no relayout).
    p = h[0:two_b]
    for l in range(1, L):
        p = jnp.maximum(p, h[l * two_b:(l + 1) * two_b])      # (2B, H)

    out = jnp.dot(p.astype(jnp.bfloat16), wl_ref[0],
                  preferred_element_type=jnp.float32)         # (2B, D)
    o_ref[0] = out + bl_ref[0]


def dssm_prepare_params(params):
    """One-time weight packing: fuse emb into conv weight, transpose, cast."""
    emb = jnp.asarray(params["emb"], jnp.float32)
    wc_q, bc_q, wl_q, bl_q = params["query"]
    wc_t, bc_t, wl_t, bl_t = params["target"]
    H = wc_q.shape[0]
    D = wl_q.shape[0]
    # Fold the embedding gather into the conv weight: (V, E) @ (E, H) -> (V, H).
    # Product in f32, then a single bf16 cast (avoids double rounding).
    wf = jnp.stack([emb @ wc_q.T, emb @ wc_t.T]).astype(jnp.bfloat16)   # (2, V, H)
    bc = jnp.stack([bc_q, bc_t]).reshape(2, 1, H).astype(jnp.float32)   # (2, 1, H)
    wl = jnp.stack([wl_q.T, wl_t.T]).astype(jnp.bfloat16)               # (2, H, D)
    bl = jnp.stack([bl_q, bl_t]).reshape(2, 1, D).astype(jnp.float32)   # (2, 1, D)
    return {"wf": wf, "bc": bc, "wl": wl, "bl": bl}


def dssm_forward(packed, query, correct, wrong):
    """Fused DSSM forward: returns (query_enc, correct_enc, wrong_enc).

    packed = dssm_prepare_params(params) (computed once, outside the hot path).
    """
    wf, bc, wl, bl = packed["wf"], packed["bc"], packed["wl"], packed["bl"]
    _, V, H = wf.shape
    D = wl.shape[2]
    B, L = query.shape

    # Group 0: query duplicated into both halves (second half discarded);
    # group 1: correct || wrong (both use the shared target weights).
    tok = jnp.stack([
        jnp.stack([query, query]),
        jnp.stack([correct, wrong]),
    ]).astype(jnp.int32)                                      # (2, 2, B, L)
    # Row order per group = (l, half, b) so the in-kernel pool over L yields a
    # (2B, H) block whose row index is half*B + b.
    tok = jnp.transpose(tok, (0, 3, 1, 2)).reshape(2, L * 2 * B)
    onehot = jax.nn.one_hot(tok, V, dtype=jnp.bfloat16)       # (2, 2*L*B, V)

    out = pl.pallas_call(
        dssm_kernel,
        out_shape=jax.ShapeDtypeStruct((2, 2 * B, D), jnp.float32),
        grid_spec=pl.GridSpec(
            grid=(2,),
            in_specs=[
                pl.BlockSpec((1, 2 * L * B, V), lambda g: (g, 0, 0)),  # one-hot
                pl.BlockSpec((1, V, H), lambda g: (g, 0, 0)),          # fused W
                pl.BlockSpec((1, 1, H), lambda g: (g, 0, 0)),          # conv bias
                pl.BlockSpec((1, H, D), lambda g: (g, 0, 0)),          # linear W^T
                pl.BlockSpec((1, 1, D), lambda g: (g, 0, 0)),          # linear bias
            ],
            out_specs=pl.BlockSpec((1, 2 * B, D), lambda g: (g, 0, 0)),
        ),
        compiler_params=pltpu.CompilerParams(
            dimension_semantics=("parallel",)),                # 1 step per TC on v7x
    )(onehot, wf, bc, wl, bl)

    # out[0, B:] is the duplicated query half -> discarded.
    return out[0, :B], out[1, :B], out[1, B:]


def encoder_ref(tokens, emb_table, wc, bc, wl, bl):
    """Pure-JAX f32 reference mirroring the PyTorch forward exactly."""
    x = jnp.take(emb_table, tokens, axis=0).astype(jnp.float32)   # (B, L, E)
    h = jnp.einsum("ble,he->blh", x, wc) + bc                     # conv1d k=1
    h = jnp.maximum(h, 0.0)
    p = jnp.max(h, axis=1)                                        # max over L
    return jnp.einsum("bh,dh->bd", p, wl) + bl


if __name__ == "__main__":
    # Small shapes consistent with the module (hidden=output=128 defaults).
    VOCAB, E = 32, 16
    H, D = 128, 128
    B, L = 16, 8      # 2*B*L = 256 rows for the target pair -> clean MXU passes

    key = jax.random.PRNGKey(0)
    ks = jax.random.split(key, 12)

    emb = jax.random.normal(ks[0], (VOCAB, E), jnp.float32) * 0.5

    def make_encoder_params(k0, k1, k2, k3):
        # Conv1d weight (H, E, 1) squeezed to (H, E); Linear weight (D, H).
        wc = jax.random.normal(k0, (H, E), jnp.float32) * 0.1
        bc = jax.random.normal(k1, (H,), jnp.float32) * 0.1
        wl = jax.random.normal(k2, (D, H), jnp.float32) * 0.1
        bl = jax.random.normal(k3, (D,), jnp.float32) * 0.1
        return (wc, bc, wl, bl)

    params = {
        "emb": emb,
        "query": make_encoder_params(ks[1], ks[2], ks[3], ks[4]),
        "target": make_encoder_params(ks[5], ks[6], ks[7], ks[8]),
    }

    query = jax.random.randint(ks[9], (B, L), 0, VOCAB, dtype=jnp.int32)
    correct = jax.random.randint(ks[10], (B, L), 0, VOCAB, dtype=jnp.int32)
    wrong = jax.random.randint(ks[11], (B, L), 0, VOCAB, dtype=jnp.int32)

    # One-time weight packing (hoisted out of the per-call forward path).
    packed = dssm_prepare_params(params)
    packed = jax.tree_util.tree_map(jax.block_until_ready, packed)

    fwd = jax.jit(dssm_forward)
    q_out, c_out, w_out = fwd(packed, query, correct, wrong)
    jax.block_until_ready((q_out, c_out, w_out))

    # Sanity-check against the pure-JAX f32 reference (tol covers bf16 MXU and
    # the single bf16 rounding of the fused emb@Wc weight).
    q_ref = encoder_ref(query, emb, *params["query"])
    c_ref = encoder_ref(correct, emb, *params["target"])
    w_ref = encoder_ref(wrong, emb, *params["target"])
    assert q_out.shape == (B, D) and c_out.shape == (B, D) and w_out.shape == (B, D)
    assert jnp.allclose(q_out, q_ref, rtol=2e-2, atol=2e-2)
    assert jnp.allclose(c_out, c_ref, rtol=2e-2, atol=2e-2)
    assert jnp.allclose(w_out, w_ref, rtol=2e-2, atol=2e-2)

    print("KERNEL_OK")
</pallas_src>

<mosaic_0001>
module attributes {stable_mosaic.version = 11 : i64} {
  func.func @dssm_kernel(%arg0: i32, %arg1: memref<1x256x32xbf16, #tpu.memory_space<vmem>>, %arg2: memref<1x32x128xbf16, #tpu.memory_space<vmem>>, %arg3: memref<1x1x128xf32, #tpu.memory_space<vmem>>, %arg4: memref<1x128x128xbf16, #tpu.memory_space<vmem>>, %arg5: memref<1x1x128xf32, #tpu.memory_space<vmem>>, %arg6: memref<1x32x128xf32, #tpu.memory_space<vmem>>) attributes {dimension_semantics = [#tpu.dimension_semantics<parallel>], iteration_bounds = array<i64: 2>, scalar_prefetch = 0 : i64, scratch_operands = 0 : i64, tpu.core_type = #tpu.core_type<tc>, window_params = [{transform_indices = @transform_0, window_bounds = array<i64: 1, 256, 32>}, {transform_indices = @transform_1, window_bounds = array<i64: 1, 32, 128>}, {transform_indices = @transform_2, window_bounds = array<i64: 1, 1, 128>}, {transform_indices = @transform_3, window_bounds = array<i64: 1, 128, 128>}, {transform_indices = @transform_4, window_bounds = array<i64: 1, 1, 128>}, {transform_indices = @transform_5, window_bounds = array<i64: 1, 32, 128>}]} {
    %c0 = arith.constant 0 : index
    %c0_0 = arith.constant 0 : index
    %c0_1 = arith.constant 0 : index
    %0 = vector.load %arg1[%c0, %c0_0, %c0_1] : memref<1x256x32xbf16, #tpu.memory_space<vmem>>, vector<1x256x32xbf16>
    %1 = vector.shape_cast %0 : vector<1x256x32xbf16> to vector<256x32xbf16>
    %c0_2 = arith.constant 0 : index
    %c0_3 = arith.constant 0 : index
    %c0_4 = arith.constant 0 : index
    %2 = vector.load %arg2[%c0_2, %c0_3, %c0_4] : memref<1x32x128xbf16, #tpu.memory_space<vmem>>, vector<1x32x128xbf16>
    %3 = vector.shape_cast %2 : vector<1x32x128xbf16> to vector<32x128xbf16>
    %cst = arith.constant dense<0.000000e+00> : vector<256x128xf32>
    %4 = tpu.matmul %1, %3, %cst {dimension_numbers = #tpu.dot_dimension_numbers<[1], [0], [0], [1], [0, 0, 1, 1], [], []>} : vector<256x32xbf16>, vector<32x128xbf16>, vector<256x128xf32> -> vector<256x128xf32>
    %c0_5 = arith.constant 0 : index
    %c0_6 = arith.constant 0 : index
    %c0_7 = arith.constant 0 : index
    %5 = vector.load %arg3[%c0_5, %c0_6, %c0_7] : memref<1x1x128xf32, #tpu.memory_space<vmem>>, vector<1x1x128xf32>
    %6 = vector.shape_cast %5 : vector<1x1x128xf32> to vector<1x128xf32>
    %7 = vector.broadcast %6 : vector<1x128xf32> to vector<256x128xf32>
    %8 = arith.addf %4, %7 : vector<256x128xf32>
    %cst_8 = arith.constant 0.000000e+00 : f32
    %9 = vector.broadcast %cst_8 : f32 to vector<256x128xf32>
    %10 = arith.maximumf %8, %9 : vector<256x128xf32>
    %11 = vector.extract_strided_slice %10 {offsets = [0, 0], sizes = [32, 128], strides = [1, 1]} : vector<256x128xf32> to vector<32x128xf32>
    %12 = vector.extract_strided_slice %10 {offsets = [32, 0], sizes = [32, 128], strides = [1, 1]} : vector<256x128xf32> to vector<32x128xf32>
    %13 = arith.maximumf %11, %12 : vector<32x128xf32>
    %14 = vector.extract_strided_slice %10 {offsets = [64, 0], sizes = [32, 128], strides = [1, 1]} : vector<256x128xf32> to vector<32x128xf32>
    %15 = arith.maximumf %13, %14 : vector<32x128xf32>
    %16 = vector.extract_strided_slice %10 {offsets = [96, 0], sizes = [32, 128], strides = [1, 1]} : vector<256x128xf32> to vector<32x128xf32>
    %17 = arith.maximumf %15, %16 : vector<32x128xf32>
    %18 = vector.extract_strided_slice %10 {offsets = [128, 0], sizes = [32, 128], strides = [1, 1]} : vector<256x128xf32> to vector<32x128xf32>
    %19 = arith.maximumf %17, %18 : vector<32x128xf32>
    %20 = vector.extract_strided_slice %10 {offsets = [160, 0], sizes = [32, 128], strides = [1, 1]} : vector<256x128xf32> to vector<32x128xf32>
    %21 = arith.maximumf %19, %20 : vector<32x128xf32>
    %22 = vector.extract_strided_slice %10 {offsets = [192, 0], sizes = [32, 128], strides = [1, 1]} : vector<256x128xf32> to vector<32x128xf32>
    %23 = arith.maximumf %21, %22 : vector<32x128xf32>
    %24 = vector.extract_strided_slice %10 {offsets = [224, 0], sizes = [32, 128], strides = [1, 1]} : vector<256x128xf32> to vector<32x128xf32>
    %25 = arith.maximumf %23, %24 : vector<32x128xf32>
    %26 = arith.truncf %25 : vector<32x128xf32> to vector<32x128xbf16>
    %c0_9 = arith.constant 0 : index
    %c0_10 = arith.constant 0 : index
    %c0_11 = arith.constant 0 : index
    %27 = vector.load %arg4[%c0_9, %c0_10, %c0_11] : memref<1x128x128xbf16, #tpu.memory_space<vmem>>, vector<1x128x128xbf16>
    %28 = vector.shape_cast %27 : vector<1x128x128xbf16> to vector<128x128xbf16>
    %cst_12 = arith.constant dense<0.000000e+00> : vector<32x128xf32>
    %29 = tpu.matmul %26, %28, %cst_12 {dimension_numbers = #tpu.dot_dimension_numbers<[1], [0], [0], [1], [0, 0, 1, 1], [], []>} : vector<32x128xbf16>, vector<128x128xbf16>, vector<32x128xf32> -> vector<32x128xf32>
    %c0_13 = arith.constant 0 : index
    %c0_14 = arith.constant 0 : index
    %c0_15 = arith.constant 0 : index
    %30 = vector.load %arg5[%c0_13, %c0_14, %c0_15] : memref<1x1x128xf32, #tpu.memory_space<vmem>>, vector<1x1x128xf32>
    %31 = vector.shape_cast %30 : vector<1x1x128xf32> to vector<1x128xf32>
    %32 = vector.broadcast %31 : vector<1x128xf32> to vector<32x128xf32>
    %33 = arith.addf %29, %32 : vector<32x128xf32>
    %c0_16 = arith.constant 0 : index
    %c0_17 = arith.constant 0 : index
    %c0_18 = arith.constant 0 : index
    %34 = vector.load %arg6[%c0_16, %c0_17, %c0_18] : memref<1x32x128xf32, #tpu.memory_space<vmem>>, vector<1x32x128xf32>
    %35 = vector.shape_cast %34 : vector<1x32x128xf32> to vector<32x128xf32>
    %36 = vector.shape_cast %33 : vector<32x128xf32> to vector<1x32x128xf32>
    tpu.vector_store %arg6[%c0_16, %c0_17, %c0_18], %36 {strides = array<i32>} : memref<1x32x128xf32, #tpu.memory_space<vmem>>, vector<1x32x128xf32>,
    return
  }
  func.func @transform_0(%arg0: i32) -> (i32, i32, i32) {
    %c0_i32 = arith.constant 0 : i32
    %c0_i32_0 = arith.constant 0 : i32
    %c0_i32_1 = arith.constant 0 : i32
    return %arg0, %c0_i32, %c0_i32_0 : i32, i32, i32
  }
  func.func @transform_1(%arg0: i32) -> (i32, i32, i32) {
    %c0_i32 = arith.constant 0 : i32
    %c0_i32_0 = arith.constant 0 : i32
    %c0_i32_1 = arith.constant 0 : i32
    return %arg0, %c0_i32, %c0_i32_0 : i32, i32, i32
  }
  func.func @transform_2(%arg0: i32) -> (i32, i32, i32) {
    %c0_i32 = arith.constant 0 : i32
    %c0_i32_0 = arith.constant 0 : i32
    %c0_i32_1 = arith.constant 0 : i32
    return %arg0, %c0_i32, %c0_i32_0 : i32, i32, i32
  }
  func.func @transform_3(%arg0: i32) -> (i32, i32, i32) {
    %c0_i32 = arith.constant 0 : i32
    %c0_i32_0 = arith.constant 0 : i32
    %c0_i32_1 = arith.constant 0 : i32
    return %arg0, %c0_i32, %c0_i32_0 : i32, i32, i32
  }
  func.func @transform_4(%arg0: i32) -> (i32, i32, i32) {
    %c0_i32 = arith.constant 0 : i32
    %c0_i32_0 = arith.constant 0 : i32
    %c0_i32_1 = arith.constant 0 : i32
    return %arg0, %c0_i32, %c0_i32_0 : i32, i32, i32
  }
  func.func @transform_5(%arg0: i32) -> (i32, i32, i32) {
    %c0_i32 = arith.constant 0 : i32
    %c0_i32_0 = arith.constant 0 : i32
    %c0_i32_1 = arith.constant 0 : i32
    return %arg0, %c0_i32, %c0_i32_0 : i32, i32, i32
  }
}

</mosaic_0001>

<bundles_post_ra>
// kernel: eq.1
= control target key start
LH: loop header
LB: loop body
LE: loop exit
PB: predicated region body
PF: predicated region fallthrough
CT: control target
= control target key end

     0   :  { %vm83_vm0 = vcmask 1041409   ;;  %vm87_vm1 = vcmask 1042434   ;;  %vm91_vm2 = vcmask 1043459   ;;  %s286_s9 = smov 80   ;;  %s287_s10 = smov 96   ;;  %vm93_vm3 = vcmask 130048   ;;  %s380_s0 = inlined_call_operand.vmem [shape: s32[2,8,2,16], index: 0, kind: input, shape index: {}]   ;;  %s381_s1 = inlined_call_operand.vmem [shape: s32[2,256], index: 1, kind: output, shape index: {}]  }
   0x1   :  { %v262_v0 = vld [vmem:[%s380_s0 + $0x1e] sm:$0x3]  ;;  %v266_v1 = vld [vmem:[%s380_s0 + $0x16] sm:$0x3]  ;;  %v270_v2 = vld [vmem:[%s380_s0 + $0xe] sm:$0x3] }
   0x2   :  { %8 = vst [vmem:[#allocation1 + $0x78] sm:$0x3] %v262_v0  ;;  %28 = vst [vmem:[#allocation1 + $0x58] sm:$0x3] %v266_v1  ;;  %v274_v3 = vld [vmem:[%s380_s0 + $0x6] sm:$0x3] }
   0x3   :  { %48 = vst [vmem:[#allocation1 + $0x38] sm:$0x3] %v270_v2  ;;  %68 = vst [vmem:[#allocation1 + $0x18] sm:$0x3] %v274_v3  ;;  %v263_v4 = vld [vmem:[%s380_s0 + $0x1c] sm:$0x3] }
   0x4   :  { %v267_v5 = vld [vmem:[%s380_s0 + $0x14] sm:$0x3]  ;;  %v271_v6 = vld [vmem:[%s380_s0 + $0xc] sm:$0x3]  ;;  %13 = vst [vmem:[#allocation1 + $0x70] sm:$0x3] %v263_v4 }
   0x5   :  { %33 = vst [vmem:[#allocation1 + $0x50] sm:$0x3] %v267_v5  ;;  %53 = vst [vmem:[#allocation1 + $0x30] sm:$0x3] %v271_v6  ;;  %v275_v7 = vld [vmem:[%s380_s0 + $0x4] sm:$0x3] }
   0x6   :  { %v264_v8 = vld [vmem:[%s380_s0 + $0x1a] sm:$0x3]  ;;  %73 = vst [vmem:[#allocation1 + $0x10] sm:$0x3] %v275_v7  ;;  %v268_v9 = vld [vmem:[%s380_s0 + $0x12] sm:$0x3] }
   0x7   :  { %18 = vst [vmem:[#allocation1 + $0x68] sm:$0x3] %v264_v8  ;;  %v272_v10 = vld [vmem:[%s380_s0 + $0xa] sm:$0x3]  ;;  %38 = vst [vmem:[#allocation1 + $0x48] sm:$0x3] %v268_v9 }
   0x8   :  { %58 = vst [vmem:[#allocation1 + $0x28] sm:$0x3] %v272_v10  ;;  %v276_v11 = vld [vmem:[%s380_s0 + $0x2] sm:$0x3]  ;;  %v265_v12 = vld [vmem:[%s380_s0 + $0x18] sm:$0x3] }
   0x9   :  { %77 = vst [vmem:[#allocation1 + $0x8] sm:$0x3] %v276_v11  ;;  %23 = vst [vmem:[#allocation1 + $0x60] sm:$0x3] %v265_v12  ;;  %v269_v13 = vld [vmem:[%s380_s0 + $0x10] sm:$0x3] }
   0xa   :  { %v273_v14 = vld [vmem:[%s380_s0 + $0x8] sm:$0x3]  ;;  %v78_v15 = vld [vmem:[%s380_s0] sm:$0x3]  ;;  %43 = vst [vmem:[#allocation1 + $0x40] sm:$0x3] %v269_v13 }
   0xb   :  { %63 = vst [vmem:[#allocation1 + $0x20] sm:$0x3] %v273_v14  ;;  %79 = vst [vmem:[#allocation1] sm:$0x3] %v78_v15  ;;  %v100_v16 = vld [vmem:[#allocation1 + $0x58] sm:$0x2]  }
   0xc   :  { %v104_v17 = vld [vmem:[#allocation1 + $0x37] sm:$0x4]   ;;  %v118_v20 = vld [vmem:[#allocation1 + $0x18] sm:$0x1]   ;;  %v140_v23 = vld [vmem:[#allocation1 + $0x50] sm:$0x2]  }
   0xd   :  { %v108_v18 = vld [vmem:[#allocation1 + $0x76] sm:$0x8]   ;;  %v120_v21 = vld [vmem:[#allocation1 + $0x57] sm:$0x2]   ;;  %v144_v24 = vld [vmem:[#allocation1 + $0x2f] sm:$0x4]  }
   0xe   :  { %v98_v19 = vld [vmem:[#allocation1 + $0x19] sm:$0x1]   ;;  %v148_v25 = vld [vmem:[#allocation1 + $0x6e] sm:$0x8]   ;;  %v122_v26 = vsel %vm83_vm0, %v120_v21, %v118_v20  ;;  %v124_v29 = vld [vmem:[#allocation1 + $0x36] sm:$0x4]  }
   0xf   :  { %v102_v22 = vsel %vm83_vm0, %v100_v16, %v98_v19  ;;  %v138_v28 = vld [vmem:[#allocation1 + $0x11] sm:$0x1]   ;;  %v128_v30 = vld [vmem:[#allocation1 + $0x75] sm:$0x8]   ;;  %v126_v33 = vsel %vm87_vm1, %v124_v29, %v122_v26  ;;  %v158_v34 = vld [vmem:[#allocation1 + $0x10] sm:$0x1]  }
  0x10   :  { %v106_v27 = vsel %vm87_vm1, %v104_v17, %v102_v22  ;;  %v142_v32 = vsel %vm83_vm0, %v140_v23, %v138_v28  ;;  %v160_v35 = vld [vmem:[#allocation1 + $0x4f] sm:$0x2]   ;;  %s285_s0 = smov 112   ;;  %v178_v40 = vld [vmem:[#allocation1 + $0x9] sm:$0x1]   ;;  %v130_v43 = vsel %vm91_vm2, %v128_v30, %v126_v33  ;;  %s288_s11 = smov 64  }
  0x11   :  { %v110_v31 = vsel %vm91_vm2, %v108_v18, %v106_v27  ;;  %v164_v36 = vld [vmem:[#allocation1 + $0x2e] sm:$0x4]   ;;  %v146_v37 = vsel %vm87_vm1, %v144_v24, %v142_v32  ;;  %v162_v38 = vsel %vm83_vm0, %v160_v35, %v158_v34  ;;  %v180_v41 = vld [vmem:[#allocation1 + $0x48] sm:$0x2]   ;;  %v198_v47 = vld [vmem:[#allocation1 + $0x8] sm:$0x1]  }
  0x12   :  { %111 = vrot.lane.b32.xlu0 %v110_v31, %s285_s0  ;;  %v168_v39 = vld [vmem:[#allocation1 + $0x6d] sm:$0x8]   ;;  %v150_v42 = vsel %vm91_vm2, %v148_v25, %v146_v37  ;;  %v166_v44 = vsel %vm87_vm1, %v164_v36, %v162_v38  ;;  %v182_v45 = vsel %vm83_vm0, %v180_v41, %v178_v40  ;;  %v184_v46 = vld [vmem:[#allocation1 + $0x27] sm:$0x4]   ;;  %v200_v50 = vld [vmem:[#allocation1 + $0x47] sm:$0x2]  }
  0x13   :  { %151 = vrot.lane.b32.xlu1 %v150_v42, %s286_s9  ;;  %v186_v48 = vsel %vm87_vm1, %v184_v46, %v182_v45  ;;  %v188_v49 = vld [vmem:[#allocation1 + $0x66] sm:$0x8]   ;;  %v204_v51 = vld [vmem:[#allocation1 + $0x26] sm:$0x4]   ;;  %v170_v52 = vsel %vm91_vm2, %v168_v39, %v166_v44  ;;  %v202_v53 = vsel %vm83_vm0, %v200_v50, %v198_v47  ;;  %v82_v54 = vld [vmem:[#allocation1 + $0x1f] sm:$0x2]  }
  0x14   :  { %v218_v55 = vld [vmem:[#allocation1 + $0x1] sm:$0x1]   ;;  %v206_v57 = vsel %vm87_vm1, %v204_v51, %v202_v53  ;;  %v208_v58 = vld [vmem:[#allocation1 + $0x65] sm:$0x8]   ;;  %v80_v61 = vld [vmem:[#allocation1] sm:$0x1]   ;;  %v190_v62 = vsel %vm91_vm2, %v188_v49, %v186_v48 }
  0x15   :  { %v220_v56 = vld [vmem:[#allocation1 + $0x40] sm:$0x2]   ;;  %v84_v63 = vsel %vm83_vm0, %v82_v54, %v80_v61  ;;  %v86_v0 = vld [vmem:[#allocation1 + $0x3e] sm:$0x4]   ;;  %v210_v5 = vsel %vm91_vm2, %v208_v58, %v206_v57  ;;  %s289_s12 = smov 48   ;;  %s290_s13 = smov 32  }
  0x16   :  { %131 = vrot.lane.b32.xlu0 %v130_v43, %s287_s10  ;;  %v222_v59 = vsel %vm83_vm0, %v220_v56, %v218_v55  ;;  %v224_v60 = vld [vmem:[#allocation1 + $0x1f] sm:$0x4]   ;;  %v90_v1 = vld [vmem:[#allocation1 + $0x5d] sm:$0x8]   ;;  %v88_v4 = vsel %vm87_vm1, %v86_v0, %v84_v63  ;;  %s291_s14 = smov 16   ;;  %vm113_vm4 = vcmask 1048448  }
  0x17   :  { %171 = vrot.lane.b32.xlu1 %v170_v52, %s288_s11  ;;  %v226_v2 = vsel %vm87_vm1, %v224_v60, %v222_v59  ;;  %v228_v3 = vld [vmem:[#allocation1 + $0x5e] sm:$0x8]   ;;  %v92_v6 = vsel %vm91_vm2, %v90_v1, %v88_v4  ;;  %vm133_vm5 = vcmask 917248   ;;  %vm153_vm6 = vcmask 786048  }
  0x18   :  { %94 = vst.msk [vmem:[#allocation0] ss:$8 sm:$0x3] %vm93_vm3, %v92_v6   ;;  %96 = vst.msk [vmem:[#allocation0 - $0xf] ss:$8 sm:$0xc] %vm93_vm3, %v92_v6   ;;  %v230_v7 = vsel %vm91_vm2, %v228_v3, %v226_v2 }
  0x19   :  { %vm173_vm7 = vcmask 654848   ;;  %vm193_vm8 = vcmask 523648   ;;  %vm213_vm9 = vcmask 392448   ;;  %vm233_vm10 = vcmask 261248  }
  0x1a   :  { %191 = vrot.lane.b32.xlu0 %v190_v62, %s289_s12 }
  0x1b   :  { %211 = vrot.lane.b32.xlu1 %v210_v5, %s290_s13 }
  0x1e   :  { %231 = vrot.lane.b32.xlu0 %v230_v7, %s291_s14 }
  0x84   :  { %v112_v8 = vpop.permute.xlu0 %111  }
  0x85   :  { %114 = vst.msk [vmem:[#allocation0] sm:$0x3] %vm113_vm4, %v112_v8   ;;  %116 = vst.msk [vmem:[#allocation0 + $0x6] sm:$0xc] %vm113_vm4, %v112_v8   ;;  %v152_v9 = vpop.permute.xlu1 %151  }
  0x88   :  { %v132_v10 = vpop.permute.xlu0 %131  }
  0x89   :  { %134 = vst.msk [vmem:[#allocation0] sm:$0x3] %vm133_vm5, %v132_v10   ;;  %136 = vst.msk [vmem:[#allocation0 + $0x6] sm:$0xc] %vm133_vm5, %v132_v10   ;;  %v172_v11 = vpop.permute.xlu1 %171  }
  0x8a   :  { %154 = vst.msk [vmem:[#allocation0] sm:$0x3] %vm153_vm6, %v152_v9   ;;  %156 = vst.msk [vmem:[#allocation0 + $0x6] sm:$0xc] %vm153_vm6, %v152_v9  }
  0x8b   :  { %174 = vst.msk [vmem:[#allocation0] sm:$0x3] %vm173_vm7, %v172_v11   ;;  %176 = vst.msk [vmem:[#allocation0 + $0x6] sm:$0xc] %vm173_vm7, %v172_v11  }
  0x8c   :  { %v192_v12 = vpop.permute.xlu0 %191  }
  0x8d   :  { %194 = vst.msk [vmem:[#allocation0] sm:$0x3] %vm193_vm8, %v192_v12   ;;  %196 = vst.msk [vmem:[#allocation0 + $0x6] sm:$0xc] %vm193_vm8, %v192_v12   ;;  %v212_v13 = vpop.permute.xlu1 %211  }
  0x8e   :  { %214 = vst.msk [vmem:[#allocation0] sm:$0x3] %vm213_vm9, %v212_v13   ;;  %216 = vst.msk [vmem:[#allocation0 + $0x6] sm:$0xc] %vm213_vm9, %v212_v13  }
  0x90   :  { %v232_v14 = vpop.permute.xlu0 %231  }
  0x91   :  { %234 = vst.msk [vmem:[#allocation0] sm:$0x3] %vm233_vm10, %v232_v14   ;;  %236 = vst.msk [vmem:[#allocation0 + $0x6] sm:$0xc] %vm233_vm10, %v232_v14  }
  0x98   :  { %v240_v15 = vld [vmem:[#allocation0] sm:$0x3]  ;;  %v244_v16 = vld [vmem:[#allocation0 + $0x8] sm:$0x3] }
  0x99   :  { %242 = vst [vmem:[%s381_s1] sm:$0x3] %v240_v15  ;;  %277 = vst [vmem:[%s381_s1 + $0x2] sm:$0x3] %v244_v16 }

// kernel: dssm_forward.1
= control target key start
LH: loop header
LB: loop body
LE: loop exit
PB: predicated region body
PF: predicated region fallthrough
CT: control target
= control target key end

     0   :  { %s1141_s18 = smov 0   ;;  %s1256_s0 = inlined_call_operand.vmem [shape: bf16[2,256,32], index: 0, kind: input, shape index: {}]   ;;  %s1257_s1 = inlined_call_operand.vmem [shape: bf16[2,32,128], index: 1, kind: input, shape index: {}]   ;;  %s1258_s2 = inlined_call_operand.vmem [shape: f32[2,1,128], index: 2, kind: input, shape index: {}]   ;;  %s1259_s3 = inlined_call_operand.vmem [shape: bf16[2,128,128], index: 3, kind: input, shape index: {}]   ;;  %s1260_s4 = inlined_call_operand.vmem [shape: f32[2,1,128], index: 4, kind: input, shape index: {}]   ;;  %s1261_s5 = inlined_call_operand.vmem [shape: f32[2,32,128], index: 5, kind: output, shape index: {}]  }
   0x1 LB: > { %s922_s19 = sadd.s32 4294967295, %s1109_s18   ;;  %p926_p0 = scmp.ge.s32.totalorder %s1109_s18, 1  ;;  %s1109_s18 = sphi %s1141_s18, %s15_s18  }
   0x2   : > { %p223_p1 = scmp.lt.s32.totalorder %s1109_s18, 3 }
   0x4   : > { %p224_p2 = pnand %p926_p0, %p223_p1 }
   0x5   : > { %p267_p3 = scmp.lt.s32.totalorder (!%p224_p2), %s922_s19, 1  ;;  %vm429_vm0 = vcmask (!%p224_p2), 261120  }
   0x6   : > { %227 = sbr.rel (%p224_p2) target bundleno = 523 (0x20b), region = 40 }
   0xd   : > { %s1263_s19 = smov (!%p267_p3, %s922_s19), 1 }
   0xe   : > { %s981_s20 = sshll.u32 %s1263_s19, 7  ;;  %s982_s21 = sshll.u32 %s1263_s19, 4 }
   0xf   : > { %s276_s24 = scalar_lea.vmem %s1257_s1, %s982_s21  ;;  %s1159_s27 = scalar_lea.vmem %s1256_s0, %s981_s20 }
  0x10   : > { %v1077_v0 = vld [vmem:[%s276_s24] sm:$0xff]   ;;  %v1078_v1 = vld [vmem:[%s276_s24 + $0x8] sm:$0xff]   ;;  %v1081_v4 = vld [vmem:[%s1159_s27 + $0x10] sm:$0xff]   ;;  %s983_s28 = sshll.u32 %s1263_s19, 6  ;;  %s279_s9 = scalar_lea.vmem %s1258_s2, %s1263_s19 }
  0x11   : > { %1013 = vmatprep.subr.bf16.mxu0 %v1077_v0  ;;  %v1079_v2 = vld [vmem:[%s1159_s27] sm:$0xff]   ;;  %v1080_v3 = vld [vmem:[%s1159_s27 + $0x8] sm:$0xff]   ;;  %v1082_v5 = vld [vmem:[%s1159_s27 + $0x18] sm:$0xff]   ;;  %s1173_s6 = scalar_lea.vmem %s1259_s3, %s983_s28  ;;  %s287_s12 = scalar_lea.vmem %s1260_s4, %s1263_s19 }
  0x12   : > { %1014 = vmatpush3.bf16.msra.mxu0 %v1077_v0  ;;  %1017 = vmatprep.mubr.msk.bf16.mxu0 %vm429_vm0, %v1079_v2  ;;  %v1083_v6 = vld [vmem:[%s1159_s27 + $0x20] sm:$0xff]   ;;  %v1084_v7 = vld [vmem:[%s1159_s27 + $0x28] sm:$0xff]   ;;  %v1085_v8 = vld [vmem:[%s1159_s27 + $0x30] sm:$0xff]   ;;  %s984_s13 = sshll.u32 %s1263_s19, 5 }
  0x13   : > { %1015 = vmatprep.subr.bf16.mxu0 %v1078_v1  ;;  %v1086_v9 = vld [vmem:[%s1159_s27 + $0x38] sm:$0xff]   ;;  %v1087_v10 = vld [vmem:[%s1159_s27 + $0x40] sm:$0xff]   ;;  %v1088_v11 = vld [vmem:[%s1159_s27 + $0x48] sm:$0xff]   ;;  %s292_s16 = scalar_lea.vmem %s1261_s5, %s984_s13 }
  0x14   : > { %v1089_v12 = vld [vmem:[%s1159_s27 + $0x50] sm:$0xff]   ;;  %v1090_v13 = vld [vmem:[%s1159_s27 + $0x58] sm:$0xff]   ;;  %v1091_v14 = vld [vmem:[%s1159_s27 + $0x60] sm:$0xff]  }
  0x15   : > { %v1092_v15 = vld [vmem:[%s1159_s27 + $0x68] sm:$0xff]   ;;  %v1093_v16 = vld [vmem:[%s1159_s27 + $0x70] sm:$0xff]   ;;  %v1094_v17 = vld [vmem:[%s1159_s27 + $0x78] sm:$0xff]  }
  0x16   : > { %1016 = vmatpush3.bf16.msra.mxu0 %v1078_v1  ;;  %v1095_v18 = vld [vmem:[%s1173_s6] sm:$0xff]   ;;  %v1096_v19 = vld [vmem:[%s1173_s6 + $0x8] sm:$0xff]   ;;  %v1097_v20 = vld [vmem:[%s1173_s6 + $0x10] sm:$0xff]  }
  0x17   : > { %1049 = vmatprep.subr.bf16.mxu1 %v1095_v18  ;;  %v1098_v21 = vld [vmem:[%s1173_s6 + $0x18] sm:$0xff]   ;;  %v1099_v22 = vld [vmem:[%s1173_s6 + $0x20] sm:$0xff]   ;;  %v1100_v23 = vld [vmem:[%s1173_s6 + $0x28] sm:$0xff]  }
  0x18   : > { %1050 = vmatpush3.bf16.msra.mxu1 %v1095_v18  ;;  %v1101_v24 = vld [vmem:[%s1173_s6 + $0x30] sm:$0xff]   ;;  %v1102_v25 = vld [vmem:[%s1173_s6 + $0x38] sm:$0xff]   ;;  %v1211_v30 = vld [vmem:[%s279_s9] ss:$0 sm:$0xff] }
  0x19   : > { %1018 = vmatmul.mubr.msk.bf16.vlgmr.msra.gmra.mrb[0].mxu0 %vm429_vm0, %v1080_v3  ;;  %1051 = vmatprep.subr.bf16.mxu1 %v1096_v19 }
  0x1a   : > { %1021 = vmatprep.mubr.msk.bf16.mxu0 %vm429_vm0, %v1081_v4 }
  0x1c   : > { %1052 = vmatpush3.bf16.msra.mxu1 %v1096_v19 }
  0x1d   : > { %1053 = vmatprep.subr.bf16.mxu1 %v1097_v20 }
  0x20   : > { %1054 = vmatpush3.bf16.msra.mxu1 %v1097_v20 }
  0x21   : > { %1022 = vmatmul.mubr.msk.bf16.gmra.mrb[4].mxu0 %vm429_vm0, %v1082_v5  ;;  %1055 = vmatprep.subr.bf16.mxu1 %v1098_v21 }
  0x22   : > { %1025 = vmatprep.mubr.msk.bf16.mxu0 %vm429_vm0, %v1083_v6 }
  0x24   : > { %1056 = vmatpush3.bf16.msra.mxu1 %v1098_v21 }
  0x25   : > { %1057 = vmatprep.subr.bf16.mxu1 %v1099_v22 }
  0x28   : > { %1058 = vmatpush3.bf16.msra.mxu1 %v1099_v22 }
  0x29   : > { %1026 = vmatmul.mubr.msk.bf16.gmra.mrb[8].mxu0 %vm429_vm0, %v1084_v7  ;;  %1059 = vmatprep.subr.bf16.mxu1 %v1100_v23 }
  0x2a   : > { %1029 = vmatprep.mubr.msk.bf16.mxu0 %vm429_vm0, %v1085_v8 }
  0x2c   : > { %1060 = vmatpush3.bf16.msra.mxu1 %v1100_v23 }
  0x2d   : > { %1061 = vmatprep.subr.bf16.mxu1 %v1101_v24 }
  0x30   : > { %1062 = vmatpush3.bf16.msra.mxu1 %v1101_v24 }
  0x31   : > { %1030 = vmatmul.mubr.msk.bf16.gmra.mrb[12].mxu0 %vm429_vm0, %v1086_v9  ;;  %1063 = vmatprep.subr.bf16.mxu1 %v1102_v25 }
  0x32   : > { %1033 = vmatprep.mubr.msk.bf16.mxu0 %vm429_vm0, %v1087_v10 }
  0x34   : > { %1064 = vmatpush3.bf16.msra.mxu1 %v1102_v25 }
  0x39   : > { %1034 = vmatmul.mubr.msk.bf16.gmra.mrb[16].mxu0 %vm429_vm0, %v1088_v11 }
  0x3a   : > { %1037 = vmatprep.mubr.msk.bf16.mxu0 %vm429_vm0, %v1089_v12 }
  0x41   : > { %1038 = vmatmul.mubr.msk.bf16.gmra.mrb[20].mxu0 %vm429_vm0, %v1090_v13 }
  0x42   : > { %1041 = vmatprep.mubr.msk.bf16.mxu0 %vm429_vm0, %v1091_v14 }
  0x49   : > { %1042 = vmatmul.mubr.msk.bf16.gmra.mrb[24].mxu0 %vm429_vm0, %v1092_v15 }
  0x4a   : > { %1045 = vmatprep.mubr.msk.bf16.mxu0 %vm429_vm0, %v1093_v16 }
  0x51   : > { %1046 = vmatmul.mubr.msk.bf16.gmra.mrb[28].mxu0 %vm429_vm0, %v1094_v17 }
  0xec   : > { %v1019_v26 = vpop.f32.mrb[0].mxu0 }
  0xed   : > { %v512_v27 = vpop.f32.mrb[1].mxu0  ;;  %v521_v31 = vadd.f32 %v1019_v26, %v1211_v30 }
  0xee   : > { %v1020_v28 = vpop.f32.mrb[2].mxu0  ;;  %v513_v32 = vadd.f32 %v1211_v30, %v512_v27 }
  0xef   : > { %v515_v29 = vpop.f32.mrb[3].mxu0  ;;  %v524_v34 = vadd.f32 %v1020_v28, %v1211_v30  ;;  %v641_v40 = vmax.f32 %v521_v31, 0.0 }
  0xf0   : > { %v516_v37 = vadd.f32 %v1211_v30, %v515_v29  ;;  %v639_v44 = vmax.f32 %v513_v32, 0.0 }
  0xf1   : > { %v642_v47 = vmax.f32 %v524_v34, 0.0 }
  0xf2   : > { %v640_v50 = vmax.f32 %v516_v37, 0.0 }
  0xf4   : > { %v1023_v33 = vpop.f32.mrb[4].mxu0 }
  0xf5   : > { %v537_v35 = vadd.f32 %v1023_v33, %v1211_v30  ;;  %v528_v36 = vpop.f32.mrb[5].mxu0 }
  0xf6   : > { %v529_v38 = vadd.f32 %v1211_v30, %v528_v36  ;;  %v1024_v39 = vpop.f32.mrb[6].mxu0 }
  0xf7   : > { %v645_v41 = vmax.f32 %v537_v35, 0.0  ;;  %v540_v42 = vadd.f32 %v1024_v39, %v1211_v30  ;;  %v531_v43 = vpop.f32.mrb[7].mxu0 }
  0xf8   : > { %v643_v45 = vmax.f32 %v529_v38, 0.0  ;;  %v532_v46 = vadd.f32 %v1211_v30, %v531_v43 }
  0xf9   : > { %v673_v48 = vmax.f32 %v641_v40, %v645_v41  ;;  %v646_v49 = vmax.f32 %v540_v42, 0.0 }
  0xfa   : > { %v671_v51 = vmax.f32 %v639_v44, %v643_v45  ;;  %v644_v52 = vmax.f32 %v532_v46, 0.0 }
  0xfb   : > { %v674_v53 = vmax.f32 %v642_v47, %v646_v49 }
  0xfc   : > { %v672_v54 = vmax.f32 %v640_v50, %v644_v52  ;;  %v1027_v55 = vpop.f32.mrb[8].mxu0 }
  0xfd   : > { %v553_v56 = vadd.f32 %v1027_v55, %v1211_v30  ;;  %v544_v57 = vpop.f32.mrb[9].mxu0 }
  0xfe   : > { %v545_v58 = vadd.f32 %v1211_v30, %v544_v57  ;;  %v1028_v59 = vpop.f32.mrb[10].mxu0 }
  0xff   : > { %v649_v60 = vmax.f32 %v553_v56, 0.0  ;;  %v556_v61 = vadd.f32 %v1028_v59, %v1211_v30  ;;  %v547_v62 = vpop.f32.mrb[11].mxu0 }
 0x100   : > { %v647_v63 = vmax.f32 %v545_v58, 0.0  ;;  %v548_v0 = vadd.f32 %v1211_v30, %v547_v62 }
 0x101   : > { %v677_v1 = vmax.f32 %v673_v48, %v649_v60  ;;  %v650_v2 = vmax.f32 %v556_v61, 0.0 }
 0x102   : > { %v675_v3 = vmax.f32 %v671_v51, %v647_v63  ;;  %v648_v4 = vmax.f32 %v548_v0, 0.0 }
 0x103   : > { %v678_v5 = vmax.f32 %v674_v53, %v650_v2 }
 0x104   : > { %v676_v6 = vmax.f32 %v672_v54, %v648_v4  ;;  %v1031_v7 = vpop.f32.mrb[12].mxu0 }
 0x105   : > { %v569_v8 = vadd.f32 %v1031_v7, %v1211_v30  ;;  %v560_v9 = vpop.f32.mrb[13].mxu0 }
 0x106   : > { %v561_v10 = vadd.f32 %v1211_v30, %v560_v9  ;;  %v1032_v11 = vpop.f32.mrb[14].mxu0 }
 0x107   : > { %v653_v12 = vmax.f32 %v569_v8, 0.0  ;;  %v572_v13 = vadd.f32 %v1032_v11, %v1211_v30  ;;  %v563_v14 = vpop.f32.mrb[15].mxu0 }
 0x108   : > { %v651_v15 = vmax.f32 %v561_v10, 0.0  ;;  %v564_v16 = vadd.f32 %v1211_v30, %v563_v14 }
 0x109   : > { %v681_v17 = vmax.f32 %v677_v1, %v653_v12  ;;  %v654_v18 = vmax.f32 %v572_v13, 0.0 }
 0x10a   : > { %v679_v19 = vmax.f32 %v675_v3, %v651_v15  ;;  %v652_v20 = vmax.f32 %v564_v16, 0.0 }
 0x10b   : > { %v682_v21 = vmax.f32 %v678_v5, %v654_v18 }
 0x10c   : > { %v680_v22 = vmax.f32 %v676_v6, %v652_v20  ;;  %v1035_v23 = vpop.f32.mrb[16].mxu0 }
 0x10d   : > { %v585_v24 = vadd.f32 %v1035_v23, %v1211_v30  ;;  %v576_v25 = vpop.f32.mrb[17].mxu0 }
 0x10e   : > { %v577_v26 = vadd.f32 %v1211_v30, %v576_v25  ;;  %v1036_v27 = vpop.f32.mrb[18].mxu0 }
 0x10f   : > { %v657_v28 = vmax.f32 %v585_v24, 0.0  ;;  %v588_v29 = vadd.f32 %v1036_v27, %v1211_v30  ;;  %v579_v31 = vpop.f32.mrb[19].mxu0 }
 0x110   : > { %v655_v32 = vmax.f32 %v577_v26, 0.0  ;;  %v580_v33 = vadd.f32 %v1211_v30, %v579_v31  ;;  %v970_v26 = vld [vmem:[%s287_s12] ss:$0 sm:$0xff] }
 0x111   : > { %v685_v34 = vmax.f32 %v681_v17, %v657_v28  ;;  %v658_v35 = vmax.f32 %v588_v29, 0.0 }
 0x112   : > { %v683_v36 = vmax.f32 %v679_v19, %v655_v32  ;;  %v656_v37 = vmax.f32 %v580_v33, 0.0 }
 0x113   : > { %v686_v38 = vmax.f32 %v682_v21, %v658_v35 }
 0x114   : > { %v684_v39 = vmax.f32 %v680_v22, %v656_v37  ;;  %v1039_v40 = vpop.f32.mrb[20].mxu0 }
 0x115   : > { %v601_v41 = vadd.f32 %v1039_v40, %v1211_v30  ;;  %v592_v42 = vpop.f32.mrb[21].mxu0 }
 0x116   : > { %v593_v43 = vadd.f32 %v1211_v30, %v592_v42  ;;  %v1040_v44 = vpop.f32.mrb[22].mxu0 }
 0x117   : > { %v661_v45 = vmax.f32 %v601_v41, 0.0  ;;  %v604_v46 = vadd.f32 %v1040_v44, %v1211_v30  ;;  %v595_v47 = vpop.f32.mrb[23].mxu0 }
 0x118   : > { %v659_v48 = vmax.f32 %v593_v43, 0.0  ;;  %v596_v49 = vadd.f32 %v1211_v30, %v595_v47 }
 0x119   : > { %v689_v50 = vmax.f32 %v685_v34, %v661_v45  ;;  %v662_v51 = vmax.f32 %v604_v46, 0.0 }
 0x11a   : > { %v687_v52 = vmax.f32 %v683_v36, %v659_v48  ;;  %v660_v53 = vmax.f32 %v596_v49, 0.0 }
 0x11b   : > { %v690_v54 = vmax.f32 %v686_v38, %v662_v51 }
 0x11c   : > { %v688_v55 = vmax.f32 %v684_v39, %v660_v53  ;;  %v1043_v56 = vpop.f32.mrb[24].mxu0 }
 0x11d   : > { %v617_v57 = vadd.f32 %v1043_v56, %v1211_v30  ;;  %v608_v58 = vpop.f32.mrb[25].mxu0 }
 0x11e   : > { %v609_v59 = vadd.f32 %v1211_v30, %v608_v58  ;;  %v1044_v60 = vpop.f32.mrb[26].mxu0 }
 0x11f   : > { %v665_v61 = vmax.f32 %v617_v57, 0.0  ;;  %v620_v62 = vadd.f32 %v1044_v60, %v1211_v30  ;;  %v611_v63 = vpop.f32.mrb[27].mxu0 }
 0x120   : > { %v663_v0 = vmax.f32 %v609_v59, 0.0  ;;  %v612_v1 = vadd.f32 %v1211_v30, %v611_v63 }
 0x121   : > { %v693_v2 = vmax.f32 %v689_v50, %v665_v61  ;;  %v666_v3 = vmax.f32 %v620_v62, 0.0 }
 0x122   : > { %v691_v4 = vmax.f32 %v687_v52, %v663_v0  ;;  %v664_v5 = vmax.f32 %v612_v1, 0.0 }
 0x123   : > { %v694_v6 = vmax.f32 %v690_v54, %v666_v3 }
 0x124   : > { %v692_v7 = vmax.f32 %v688_v55, %v664_v5  ;;  %v1047_v8 = vpop.f32.mrb[28].mxu0 }
 0x125   : > { %v633_v9 = vadd.f32 %v1047_v8, %v1211_v30  ;;  %v624_v10 = vpop.f32.mrb[29].mxu0 }
 0x126   : > { %v625_v11 = vadd.f32 %v1211_v30, %v624_v10  ;;  %v1048_v12 = vpop.f32.mrb[30].mxu0 }
 0x127   : > { %v669_v13 = vmax.f32 %v633_v9, 0.0  ;;  %v636_v14 = vadd.f32 %v1048_v12, %v1211_v30  ;;  %v627_v15 = vpop.f32.mrb[31].mxu0 }
 0x128   : > { %v667_v16 = vmax.f32 %v625_v11, 0.0  ;;  %v628_v17 = vadd.f32 %v1211_v30, %v627_v15 }
 0x129   : > { %v697_v18 = vmax.f32 %v693_v2, %v669_v13  ;;  %v670_v19 = vmax.f32 %v636_v14, 0.0 }
 0x12a   : > { %v668_v20 = vmax.f32 %v628_v17, 0.0  ;;  %v695_v21 = vmax.f32 %v691_v4, %v667_v16 }
 0x12b   : > { %v698_v22 = vmax.f32 %v694_v6, %v670_v19 }
 0x12c   : > { %v696_v23 = vmax.f32 %v692_v7, %v668_v20 }
 0x12d   : > { %v700_v24 = vpack.c.bf16 %v698_v22, %v697_v18 }
 0x12e   : > { %v699_v25 = vpack.c.bf16 %v696_v23, %v695_v21 }
 0x130   : > { %1065 = vmatprep.mubr.bf16.mxu1 %v699_v25 }
 0x131   : > { %1066 = vmatmul.mubr.bf16.vlgmr.msra.gmra.mrb[0].mxu1 %v700_v24 }
 0x204   : > { %v1067_v30 = vpop.f32.mrb[0].mxu1 }
 0x205   : > { %v815_v27 = vadd.f32 %v1067_v30, %v970_v26  ;;  %v806_v28 = vpop.f32.mrb[1].mxu1 }
 0x206   : > { %v807_v29 = vadd.f32 %v970_v26, %v806_v28  ;;  %v1068_v31 = vpop.f32.mrb[2].mxu1 }
 0x207   : > { %823 = vst [vmem:[%s292_s16 + $0x10] sm:$0xff] %v815_v27  ;;  %v818_v32 = vadd.f32 %v1068_v31, %v970_v26  ;;  %v809_v33 = vpop.f32.mrb[3].mxu1 }
 0x208   : > { %821 = vst [vmem:[%s292_s16] sm:$0xff] %v807_v29  ;;  %v810_v34 = vadd.f32 %v970_v26, %v809_v33 }
 0x209   : > { %824 = vst [vmem:[%s292_s16 + $0x18] sm:$0xff] %v818_v32 }
 0x20a   : > { %822 = vst [vmem:[%s292_s16 + $0x8] sm:$0xff] %v810_v34 }
 0x20b PF: > { %s15_s18 = sadd.s32 1, %s1109_s18  }
 0x20c   : > { %p12_p4 = scmp.ge.s32.totalorder %s15_s18, 4  }
 0x20e   :  { %14 = sbr.rel (!%p12_p4) target bundleno = 1 (0x1), region = 82 }

</bundles_post_ra>
